<compile_context>
chip_gen: v7x
topology: tpu7x:2x2x1
jax: 0.10.0
libtpu: 0.0.40
codegen_flags: <defaults>
</compile_context>

<pallas_src>
import jax
import jax.numpy as jnp
from jax.experimental import pallas as pl
from jax.experimental.pallas import tpu as pltpu


def _classifier_kernel(x_ref, w_ref, b_ref, o_ref):
    # x: (TILE_B, F), w: (F, N), b: (1, N) -> o: (TILE_B, N)
    # MXU matmul in the native input dtype (bf16 native path), f32 accumulate.
    logits = jnp.dot(x_ref[...], w_ref[...],
                     preferred_element_type=jnp.float32)
    logits = logits + b_ref[...]                      # bias in f32

    # Numerically-stable log_softmax along the class axis (all f32 math;
    # important on v5e which has no bf16 VPU/EUP).
    m = jnp.max(logits, axis=-1, keepdims=True)
    shifted = logits - m
    lse = jnp.log(jnp.sum(jnp.exp(shifted), axis=-1, keepdims=True))
    o_ref[...] = (shifted - lse).astype(o_ref.dtype)


def _round_up(x, m):
    return ((x + m - 1) // m) * m


def classifier_forward(x, w_t, b, *, tile_b=4096):
    """x: (B, ...) -> log-probs (B, n_out), f32.

    x may be f32 or bf16 (bf16 halves HBM read traffic and uses the MXU's
    native bf16 path); w_t is the transposed PyTorch weight (F, n_out);
    b is (n_out,).
    """
    batch = x.shape[0]
    x2d = x.reshape(batch, -1)              # x.view(B, -1)  (layout glue)
    f_in = x2d.shape[1]
    n_out = w_t.shape[1]
    assert w_t.shape[0] == f_in

    b2d = b.astype(jnp.float32).reshape(1, n_out)

    # ---- batch tiling ------------------------------------------------------
    # Multiple of 8 sublanes; clamp to ~B/2 so large batches always produce
    # >= 2 tiles (both v7x TensorCores get work).  Ragged last tile is handled
    # by Pallas' masked boundary DMA -- no jnp.pad copy, no post-slice.
    tile_b = max(8, min(_round_up(tile_b, 8),
                        _round_up(pl.cdiv(batch, 2), 8)))
    num_tiles = pl.cdiv(batch, tile_b)

    cost = pl.CostEstimate(
        flops=2 * batch * f_in * n_out,
        transcendentals=batch * n_out,      # exp per logit (log per row ~ noise)
        bytes_accessed=(x2d.size * x2d.dtype.itemsize
                        + w_t.size * w_t.dtype.itemsize
                        + b2d.size * b2d.dtype.itemsize
                        + batch * n_out * 4),
    )

    out = pl.pallas_call(
        _classifier_kernel,
        out_shape=jax.ShapeDtypeStruct((batch, n_out), jnp.float32),
        grid=(num_tiles,),
        in_specs=[
            pl.BlockSpec((tile_b, f_in), lambda i: (i, 0)),   # x tile per step
            pl.BlockSpec((f_in, n_out), lambda i: (0, 0)),    # weights resident
            pl.BlockSpec((1, n_out), lambda i: (0, 0)),       # bias resident
        ],
        out_specs=pl.BlockSpec((tile_b, n_out), lambda i: (i, 0)),
        compiler_params=pltpu.CompilerParams(
            dimension_semantics=("parallel",),   # megacore sharding on v7x
        ),
        cost_estimate=cost,
    )(x2d, w_t, b2d)

    return out


if __name__ == "__main__":
    # Synthetic sizes: n_numneu = 64 "number neurons", batch = 2.
    # Input arrives as (B, 8, 8) and is flattened to (B, 64) by forward().
    n_numneu = 64
    n_out = 32
    batch = 2

    key = jax.random.PRNGKey(0)
    kx, kw, kb = jax.random.split(key, 3)

    x = jax.random.normal(kx, (batch, 8, 8), dtype=jnp.float32)

    # Deterministic parameter init (PyTorch Linear default: U(-1/sqrt(F), 1/sqrt(F))).
    bound = 1.0 / jnp.sqrt(jnp.float32(n_numneu))
    w = jax.random.uniform(kw, (n_out, n_numneu), jnp.float32, -bound, bound)  # (out, in)
    b = jax.random.uniform(kb, (n_out,), jnp.float32, -bound, bound)
    w_t = w.T  # (F, 32) kernel layout

    # ---- f32 path (matches PyTorch semantics) ------------------------------
    out = classifier_forward(x, w_t, b)
    out = jax.block_until_ready(out)

    x2d = x.reshape(batch, -1)
    logits_ref = x2d @ w_t + b[None, :]
    ref = jax.nn.log_softmax(logits_ref, axis=1)
    assert out.shape == (batch, n_out)
    assert jnp.allclose(out, ref, atol=1e-5), "f32 mismatch vs reference"

    # ---- bf16 HBM-traffic path (MXU bf16 dot, f32 softmax) ------------------
    out_bf16_in = classifier_forward(x.astype(jnp.bfloat16),
                                     w_t.astype(jnp.bfloat16), b)
    out_bf16_in = jax.block_until_ready(out_bf16_in)
    assert jnp.allclose(out_bf16_in, ref, atol=5e-2), "bf16-input mismatch vs reference"

    print("KERNEL_OK")
</pallas_src>

<mosaic_0001>
module attributes {stable_mosaic.version = 11 : i64} {
  func.func @_classifier_kernel(%arg0: i32, %arg1: memref<8x64xf32, #tpu.memory_space<vmem>>, %arg2: memref<64x32xf32, #tpu.memory_space<vmem>>, %arg3: memref<1x32xf32, #tpu.memory_space<vmem>>, %arg4: memref<8x32xf32, #tpu.memory_space<vmem>>) attributes {dimension_semantics = [#tpu.dimension_semantics<parallel>], iteration_bounds = array<i64: 1>, scalar_prefetch = 0 : i64, scratch_operands = 0 : i64, tpu.core_type = #tpu.core_type<tc>, window_params = [{transform_indices = @transform_0, window_bounds = array<i64: 8, 64>}, {pipeline_mode = #tpu.pipeline_mode<synchronous>, transform_indices = @transform_1, window_bounds = array<i64: 64, 32>}, {pipeline_mode = #tpu.pipeline_mode<synchronous>, transform_indices = @transform_2, window_bounds = array<i64: 1, 32>}, {transform_indices = @transform_3, window_bounds = array<i64: 8, 32>}]} {
    %c0 = arith.constant 0 : index
    %c0_0 = arith.constant 0 : index
    %0 = vector.load %arg1[%c0, %c0_0] : memref<8x64xf32, #tpu.memory_space<vmem>>, vector<8x64xf32>
    %c0_1 = arith.constant 0 : index
    %c0_2 = arith.constant 0 : index
    %1 = vector.load %arg2[%c0_1, %c0_2] : memref<64x32xf32, #tpu.memory_space<vmem>>, vector<64x32xf32>
    %cst = arith.constant dense<0.000000e+00> : vector<8x32xf32>
    %2 = tpu.matmul %0, %1, %cst {dimension_numbers = #tpu.dot_dimension_numbers<[1], [0], [0], [1], [0, 0, 1, 1], [], []>} : vector<8x64xf32>, vector<64x32xf32>, vector<8x32xf32> -> vector<8x32xf32>
    %c0_3 = arith.constant 0 : index
    %c0_4 = arith.constant 0 : index
    %3 = vector.load %arg3[%c0_3, %c0_4] : memref<1x32xf32, #tpu.memory_space<vmem>>, vector<1x32xf32>
    %4 = vector.broadcast %3 : vector<1x32xf32> to vector<8x32xf32>
    %5 = arith.addf %2, %4 : vector<8x32xf32>
    %cst_5 = arith.constant dense<0xFF800000> : vector<8xf32>
    %6 = vector.multi_reduction <maximumf>, %5, %cst_5 [1] : vector<8x32xf32> to vector<8xf32>
    %7 = vector.shape_cast %6 : vector<8xf32> to vector<8x1xf32>
    %8 = vector.broadcast %7 : vector<8x1xf32> to vector<8x32xf32>
    %9 = arith.subf %5, %8 : vector<8x32xf32>
    %10 = math.exp %9 : vector<8x32xf32>
    %cst_6 = arith.constant dense<0.000000e+00> : vector<8xf32>
    %11 = vector.multi_reduction <add>, %10, %cst_6 [1] : vector<8x32xf32> to vector<8xf32>
    %12 = vector.shape_cast %11 : vector<8xf32> to vector<8x1xf32>
    %13 = math.log %12 : vector<8x1xf32>
    %14 = vector.broadcast %13 : vector<8x1xf32> to vector<8x32xf32>
    %15 = arith.subf %9, %14 : vector<8x32xf32>
    %c0_7 = arith.constant 0 : index
    %c0_8 = arith.constant 0 : index
    %16 = vector.load %arg4[%c0_7, %c0_8] : memref<8x32xf32, #tpu.memory_space<vmem>>, vector<8x32xf32>
    tpu.vector_store %arg4[%c0_7, %c0_8], %15 {strides = array<i32>} : memref<8x32xf32, #tpu.memory_space<vmem>>, vector<8x32xf32>,
    return
  }
  func.func @transform_0(%arg0: i32) -> (i32, i32) {
    %c0_i32 = arith.constant 0 : i32
    %c0_i32_0 = arith.constant 0 : i32
    return %arg0, %c0_i32 : i32, i32
  }
  func.func @transform_1(%arg0: i32) -> (i32, i32) {
    %c0_i32 = arith.constant 0 : i32
    %c0_i32_0 = arith.constant 0 : i32
    %c0_i32_1 = arith.constant 0 : i32
    return %c0_i32, %c0_i32_0 : i32, i32
  }
  func.func @transform_2(%arg0: i32) -> (i32, i32) {
    %c0_i32 = arith.constant 0 : i32
    %c0_i32_0 = arith.constant 0 : i32
    %c0_i32_1 = arith.constant 0 : i32
    return %c0_i32, %c0_i32_0 : i32, i32
  }
  func.func @transform_3(%arg0: i32) -> (i32, i32) {
    %c0_i32 = arith.constant 0 : i32
    %c0_i32_0 = arith.constant 0 : i32
    return %arg0, %c0_i32 : i32, i32
  }
}

</mosaic_0001>

<bundles_post_ra>
// kernel: tpu_custom_call.1
= control target key start
LH: loop header
LB: loop body
LE: loop exit
PB: predicated region body
PF: predicated region fallthrough
CT: control target
= control target key end

     0   :  { %8 = vsyncpa [#allocation3], 0  ;;  %v211_v2 = vmov 0.0|0.0   ;;  %vm212_vm0 = vmmov 0   ;;  %v213_v6 = vmov 0.0   ;;  %vm31_vm1 = vcmask 523264   ;;  %s282_s0 = inlined_call_operand.vmem [shape: f32[2,64], index: 0, kind: input, shape index: {}]   ;;  %s283_s1 = inlined_call_operand.vmem [shape: f32[64,32], index: 1, kind: input, shape index: {}]   ;;  %s284_s2 = inlined_call_operand.vmem [shape: f32[1,32], index: 2, kind: input, shape index: {}]   ;;  %s285_s3 = inlined_call_operand.hbm [shape: f32[2,32], index: 3, kind: output, shape index: {}]  }
   0x1   :  { %v16_v0 = vld [vmem:[%s283_s1] sm:$0xff]  ;;  %v17_v1 = vld [vmem:[%s283_s1 + $0x8] sm:$0xff]  ;;  %165 = vmatprep.subr.bf16.mxu0 %v211_v2  ;;  %v18_v4 = vld [vmem:[%s283_s1 + $0x10] sm:$0xff]  ;;  %162 = vmatprep.mubr.msk.f32.mxu0 %vm212_vm0, %v213_v6  ;;  %vm105_vm2 = vcmask 261120  }
   0x2   :  { %v166_v3 = vpack.c.bf16 %v17_v1, %v16_v0  ;;  %v19_v5 = vld [vmem:[%s283_s1 + $0x18] sm:$0xff]  ;;  %v20_v8 = vld [vmem:[%s283_s1 + $0x20] sm:$0xff]  ;;  %v21_v9 = vld [vmem:[%s283_s1 + $0x28] sm:$0xff] }
   0x3   :  { %v169_v7 = vpack.c.bf16 %v19_v5, %v18_v4  ;;  %v172_v10 = vpack.c.bf16 %v21_v9, %v20_v8  ;;  %v22_v11 = vld [vmem:[%s283_s1 + $0x30] sm:$0xff]  ;;  %v23_v12 = vld [vmem:[%s283_s1 + $0x38] sm:$0xff]  ;;  %v15_v14 = vld [vmem:[%s282_s0] sm:$0xff] }
   0x4   :  { %167 = vmatpush3.bf16.msra.mxu0 %v166_v3  ;;  %v175_v13 = vpack.c.bf16 %v23_v12, %v22_v11  ;;  %v135_v15 = vld [vmem:[%s284_s2] ss:$0 sm:$0xff] }
   0x5   :  { %168 = vmatprep.subr.bf16.mxu0 %v211_v2 }
   0x8   :  { %170 = vmatpush3.bf16.msra.mxu0 %v169_v7 }
   0x9   :  { %171 = vmatprep.subr.bf16.mxu0 %v211_v2 }
   0xc   :  { %173 = vmatpush3.bf16.msra.mxu0 %v172_v10 }
   0xd   :  { %174 = vmatprep.subr.bf16.mxu0 %v211_v2 }
  0x10   :  { %176 = vmatpush3.bf16.msra.mxu0 %v175_v13 }
  0x13   :  { %163 = vmatmul.mubr.msk.f32.vlgmr.msra.gmra.mrb[0].mxu0 %vm31_vm1, %v15_v14 }
  0xe6   :  { %v101_v16 = vpop.f32.mrb[0].mxu0 }
  0xe7   :  { %v102_v17 = vadd.f32 %v135_v15, %v101_v16  ;;  %v164_v18 = vpop.f32.mrb[1].mxu0 }
  0xe9   :  { %v106_v19 = vsel %vm105_vm2, %v102_v17, -inf }
  0xea   :  { %107 = vmax.xlane.f32.xlu0 %v106_v19 }
 0x177   :  { %v108_v20 = vpop.xlane.xlu0 %107 }
 0x178   :  { %v109_v21 = vsub.f32 %v102_v17, %v108_v20 }
 0x17a   :  { %v110_v22 = vmul.f32 1.442695, %v109_v21 }
 0x17c   :  { %183 = vpow2.f32 %v110_v22 }
 0x186   :  { %v184_v23 = vpop.eup %183 }
 0x187   :  { %v112_v24 = vsel %vm105_vm2, %v184_v23, 0.0 }
 0x188   :  { %113 = vadd.xlane.f32.xlu0 %v112_v24 }
 0x215   :  { %v114_v25 = vpop.xlane.xlu0 %113 }
 0x216   :  { %185 = vlog2.f32 %v114_v25 }
 0x220   :  { %v186_v26 = vpop.eup %185 }
 0x221   :  { %v116_v27 = vmul.f32 0.6931472, %v186_v26 }
 0x223   :  { %v117_v28 = vsub.f32 %v109_v21, %v116_v27 }
 0x225   :  { %118 = vst.msk [vmem:[#allocation2] sm:$0xff] %vm105_vm2, %v117_v28 }
 0x226   :  { %123 = vsyncadd [#allocation3], 96  ;;  %s214_s0 = smov [#allocation2]  }
 0x227   :  { %s124_s1 = sshll.u32 %s214_s0, 4  ;;  %s125_s1 = int_to_ptr.vmem [resolvable:$true] %s124_s1 }
 0x228   :  { %s187_s2 = scalar_lea.vmem %s125_s1, 32  ;;  %s191_s5 = scalar_lea.vmem %s125_s1, 128 }
 0x229   :  { %p188_p0 = scmp.ne.s32.totalorder %s125_s1, %s187_s2  ;;  %p192_p1 = scmp.lt.s32.totalorder %s125_s1, %s125_s1 }
 0x22a   :  { %p193_p2 = scmp.lt.s32.totalorder %s191_s5, %s187_s2 }
 0x22c   :  { %p194_p3 = por %p193_p2, %p192_p1 }
 0x22e   :  { %p195_p4 = pnand %p194_p3, %p188_p0 }
 0x230   :  { %198 = shalt.err (!%p195_p4)
}
 0x231   :  { %s199_s8 = scalar_lea.hbm %s285_s3, 32 }
 0x232   :  { %p200_p5 = scmp.ne.s32.totalorder %s285_s3, %s199_s8  ;;  %p203_p6 = scmp.lt.u32.totalorder %s199_s8, %s285_s3 }
 0x234   :  { %p205_p7 = pnand %p203_p6, %p200_p5 }
 0x236   :  { %208 = shalt.err (!%p205_p7)
}
 0x237   :  { %s215_s13 = smov 32   ;;  %s216_s14 = smov 2  }
 0x238   :  { %130 = dma.vmem_to_hbm [thread:$0]  %s125_s1, 32, %s285_s3, [#allocation3], %s215_s13, %s215_s13, %s216_s14  }
 0x239   :  { %209 = dma.done.wait [#allocation3], 128  }
 0x23a   :  { %210 = vsyncadd [#allocation3], 4294967168 }
 0x23b   :  { %134 = vsyncpa [#allocation3], 1 }

</bundles_post_ra>
